<compile_context>
chip_gen: v6e
topology: v6e:2x2x1
jax: 0.10.0
libtpu: 0.0.40
codegen_flags: <defaults>
</compile_context>

<pallas_src>
import functools
import math

import jax
import jax.numpy as jnp
from jax.experimental import pallas as pl
from jax.experimental.pallas import tpu as pltpu


_VMEM_LIMIT_BYTES = 32 * 1024 * 1024  # explicit scoped-VMEM budget (safe on v5e/v6e/v7x)


# ----------------------------------------------------------------------------
# Small helpers
# ----------------------------------------------------------------------------
def _round_up(x, m):
    return ((x + m - 1) // m) * m


def _compiler_params(n_axes=1):
    return pltpu.CompilerParams(
        dimension_semantics=("parallel",) * n_axes,
        vmem_limit_bytes=_VMEM_LIMIT_BYTES,
    )


def _pick_tm(m, cap=256):
    """Row-tile size: multiple of 8, capped (keeps double-buffering alive)."""
    return min(cap, _round_up(m, 8))


def _pad_rows(x, tm):
    m = x.shape[0]
    mp = _round_up(m, tm)
    if mp != m:
        x = jnp.pad(x, ((0, mp - m), (0, 0)))
    return x, mp


def _ln_f32(x, g, b, eps):
    """Torch-semantics LayerNorm (biased variance), f32 statistics."""
    mu = jnp.mean(x, axis=-1, keepdims=True)
    xc = x - mu
    var = jnp.mean(xc * xc, axis=-1, keepdims=True)
    inv = jax.lax.rsqrt(var + eps)
    return xc * inv * g + b


def _gelu_exact(y):
    """torch nn.GELU default = exact (erf)."""
    return 0.5 * y * (1.0 + jax.lax.erf(y * jnp.float32(1.0 / math.sqrt(2.0))))


# ----------------------------------------------------------------------------
# Pallas kernels
# ----------------------------------------------------------------------------
def _ln_kernel(x_ref, g_ref, b_ref, o_ref, *, eps):
    x = x_ref[...].astype(jnp.float32)
    o_ref[...] = _ln_f32(x, g_ref[...], b_ref[...], eps).astype(o_ref.dtype)


def _gemm_epilogue_kernel(x_ref, w_ref, b_ref, t_ref, o_ref, *, act):
    """out = act(x @ w + b) + t   (bf16 MXU inputs, f32 accumulate)."""
    y = jnp.dot(x_ref[...].astype(jnp.bfloat16), w_ref[...].astype(jnp.bfloat16),
                preferred_element_type=jnp.float32) + b_ref[...]
    if act == "leaky_relu":          # torch nn.LeakyReLU default slope 0.01
        y = jnp.where(y >= 0, y, 0.01 * y)
    elif act == "gelu":
        y = _gelu_exact(y)
    y = y + t_ref[...]
    o_ref[...] = y.astype(o_ref.dtype)


def _gemm_lrelu_bn_ln_pos_kernel(x_ref, w_ref, b_ref, t_ref, g_ref, bb_ref,
                                 pos_ref, o_ref, *, eps):
    """Last conv block fused with patch-embed LayerNorm + pos-embedding add:
       out = LN(LeakyReLU(x @ w + b) + bn_shift) * g + bb ... + pos"""
    y = jnp.dot(x_ref[...].astype(jnp.bfloat16), w_ref[...].astype(jnp.bfloat16),
                preferred_element_type=jnp.float32) + b_ref[...]
    y = jnp.where(y >= 0, y, 0.01 * y)
    y = y + t_ref[...]
    y = _ln_f32(y, g_ref[...], bb_ref[...], eps) + pos_ref[...]
    o_ref[...] = y.astype(o_ref.dtype)


def _block_attn_kernel(x_ref, g_ref, b_ref, wqkv_ref, bqkv_ref, wp_ref, bp_ref,
                       o_ref, *, heads, scale, eps):
    """Full attention sub-block for one batch element per grid step:

       out = x + proj(multi_head_attn(LN1(x) @ Wqkv + bqkv))

    QKV never leaves VMEM; heads are split in-kernel with static slices (no HBM
    transposes); output is stored heads-concatenated so the lane axis is the
    full model dim D (lane-dense stores).
    """
    x = x_ref[0].astype(jnp.float32)               # (N, D)
    n_tok, d = x.shape
    dh = d // heads

    h = _ln_f32(x, g_ref[...], b_ref[...], eps)
    qkv = jnp.dot(h.astype(jnp.bfloat16), wqkv_ref[...].astype(jnp.bfloat16),
                  preferred_element_type=jnp.float32) + bqkv_ref[...]  # (N, 3D)

    head_outs = []
    for hh in range(heads):                        # unrolled, heads is static
        q_h = qkv[:, hh * dh:(hh + 1) * dh].astype(jnp.bfloat16)
        k_h = qkv[:, d + hh * dh:d + (hh + 1) * dh].astype(jnp.bfloat16)
        v_h = qkv[:, 2 * d + hh * dh:2 * d + (hh + 1) * dh].astype(jnp.bfloat16)
        s = jax.lax.dot_general(q_h, k_h, (((1,), (1,)), ((), ())),
                                preferred_element_type=jnp.float32) * scale
        m = jnp.max(s, axis=-1, keepdims=True)
        p = jnp.exp(s - m)
        p = p * pl.reciprocal(jnp.sum(p, axis=-1, keepdims=True), approx=True)
        head_outs.append(jnp.dot(p.astype(jnp.bfloat16), v_h,
                                 preferred_element_type=jnp.float32))
    o = jnp.concatenate(head_outs, axis=-1)        # (N, D)

    y = jnp.dot(o.astype(jnp.bfloat16), wp_ref[...].astype(jnp.bfloat16),
                preferred_element_type=jnp.float32) + bp_ref[...]
    o_ref[0] = (x + y).astype(o_ref.dtype)
    # TODO(synk): for large N, tile over the KV axis (flash-style online softmax)
    # instead of materializing the full (N, N) score matrix per head.


def _ln_mlp_res_kernel(x_ref, g_ref, b_ref, w1_ref, b1_ref, w2_ref, b2_ref,
                       o_ref, *, eps):
    """out = x + FC2(GELU(FC1(LN(x)))) — dim_ff intermediate stays on-chip."""
    x = x_ref[...].astype(jnp.float32)
    h = _ln_f32(x, g_ref[...], b_ref[...], eps)
    u = jnp.dot(h.astype(jnp.bfloat16), w1_ref[...].astype(jnp.bfloat16),
                preferred_element_type=jnp.float32) + b1_ref[...]
    u = _gelu_exact(u)
    y = jnp.dot(u.astype(jnp.bfloat16), w2_ref[...].astype(jnp.bfloat16),
                preferred_element_type=jnp.float32) + b2_ref[...]
    o_ref[...] = (x + y).astype(o_ref.dtype)


# ----------------------------------------------------------------------------
# Kernel wrappers (cdiv grids, row padding, bf16 boundary casts)
# ----------------------------------------------------------------------------
def layernorm(x, gamma, beta, eps=1e-5, tm_cap=256):
    m, c = x.shape
    tm = _pick_tm(m, tm_cap)
    xp, mp = _pad_rows(x, tm)
    row_spec = pl.BlockSpec((tm, c), lambda i: (i, 0))
    vec_spec = pl.BlockSpec((1, c), lambda i: (0, 0))
    cost = pl.CostEstimate(flops=int(10 * mp * c), transcendentals=int(mp),
                           bytes_accessed=int(2 * mp * c * 4))
    out = pl.pallas_call(
        functools.partial(_ln_kernel, eps=eps),
        out_shape=jax.ShapeDtypeStruct((mp, c), jnp.float32),
        grid=(mp // tm,),
        in_specs=[row_spec, vec_spec, vec_spec],
        out_specs=row_spec,
        compiler_params=_compiler_params(),
        cost_estimate=cost,
    )(xp, gamma.reshape(1, c).astype(jnp.float32),
      beta.reshape(1, c).astype(jnp.float32))
    return out[:m]


def fused_linear(x, w, b, shift=None, act="none", tm_cap=256,
                 out_dtype=jnp.float32):
    """out = act(x @ w + b) + shift, tiled over rows (used by the conv stack)."""
    m, k = x.shape
    n = w.shape[1]
    tm = _pick_tm(m, tm_cap)
    xp, mp = _pad_rows(x.astype(jnp.bfloat16), tm)
    b2 = b.reshape(1, n).astype(jnp.float32)
    t2 = (jnp.zeros((1, n), jnp.float32) if shift is None
          else shift.reshape(1, n).astype(jnp.float32))
    cost = pl.CostEstimate(
        flops=int(2 * mp * k * n), transcendentals=0,
        bytes_accessed=int(mp * k * 2 + k * n * 2 + mp * n * 4))
    out = pl.pallas_call(
        functools.partial(_gemm_epilogue_kernel, act=act),
        out_shape=jax.ShapeDtypeStruct((mp, n), out_dtype),
        grid=(mp // tm,),
        in_specs=[
            pl.BlockSpec((tm, k), lambda i: (i, 0)),
            pl.BlockSpec((k, n), lambda i: (0, 0)),
            pl.BlockSpec((1, n), lambda i: (0, 0)),
            pl.BlockSpec((1, n), lambda i: (0, 0)),
        ],
        out_specs=pl.BlockSpec((tm, n), lambda i: (i, 0)),
        compiler_params=_compiler_params(),
        cost_estimate=cost,
    )(xp, w.astype(jnp.bfloat16), b2, t2)
    return out[:m]


def fused_linear_ln_pos(x, w, b, shift, gamma, beta, pos, eps=1e-5, tm_cap=256):
    """out = LN(LeakyReLU(x @ w + b) + shift) + pos   (last conv + patch LN + pos)."""
    m, k = x.shape
    n = w.shape[1]
    tm = _pick_tm(m, tm_cap)
    xp, mp = _pad_rows(x.astype(jnp.bfloat16), tm)
    posp, _ = _pad_rows(pos.astype(jnp.float32), tm)
    cost = pl.CostEstimate(
        flops=int(2 * mp * k * n + 12 * mp * n), transcendentals=int(mp),
        bytes_accessed=int(mp * k * 2 + k * n * 2 + 2 * mp * n * 4))
    out = pl.pallas_call(
        functools.partial(_gemm_lrelu_bn_ln_pos_kernel, eps=eps),
        out_shape=jax.ShapeDtypeStruct((mp, n), jnp.float32),
        grid=(mp // tm,),
        in_specs=[
            pl.BlockSpec((tm, k), lambda i: (i, 0)),
            pl.BlockSpec((k, n), lambda i: (0, 0)),
            pl.BlockSpec((1, n), lambda i: (0, 0)),   # conv bias (scale folded)
            pl.BlockSpec((1, n), lambda i: (0, 0)),   # BN shift
            pl.BlockSpec((1, n), lambda i: (0, 0)),   # LN gamma
            pl.BlockSpec((1, n), lambda i: (0, 0)),   # LN beta
            pl.BlockSpec((tm, n), lambda i: (i, 0)),  # pos embedding
        ],
        out_specs=pl.BlockSpec((tm, n), lambda i: (i, 0)),
        compiler_params=_compiler_params(),
        cost_estimate=cost,
    )(xp, w.astype(jnp.bfloat16),
      b.reshape(1, n).astype(jnp.float32),
      shift.reshape(1, n).astype(jnp.float32),
      gamma.reshape(1, n).astype(jnp.float32),
      beta.reshape(1, n).astype(jnp.float32),
      posp)
    return out[:m]


def block_attention(x, ln_g, ln_b, qkv_w, qkv_b, proj_w, proj_b, heads, eps=1e-5):
    """x: (B, N, D) -> x + proj(MHA(LN1(x) @ Wqkv + bqkv)). One batch elem / step."""
    bsz, n, d = x.shape
    dh = d // heads
    scale = dh ** (-0.5)
    seq_spec = pl.BlockSpec((1, n, d), lambda i: (i, 0, 0))
    vec_d = pl.BlockSpec((1, d), lambda i: (0, 0))
    cost = pl.CostEstimate(
        flops=int(4 * bsz * heads * n * n * dh + 8 * bsz * n * d * d),
        transcendentals=int(bsz * heads * n * n),
        bytes_accessed=int(2 * bsz * n * d * 4 + 4 * d * d * 2))
    return pl.pallas_call(
        functools.partial(_block_attn_kernel, heads=heads, scale=scale, eps=eps),
        out_shape=jax.ShapeDtypeStruct((bsz, n, d), jnp.float32),
        grid=(bsz,),
        in_specs=[seq_spec, vec_d, vec_d,
                  pl.BlockSpec((d, 3 * d), lambda i: (0, 0)),
                  pl.BlockSpec((1, 3 * d), lambda i: (0, 0)),
                  pl.BlockSpec((d, d), lambda i: (0, 0)),
                  vec_d],
        out_specs=seq_spec,
        compiler_params=_compiler_params(),
        cost_estimate=cost,
    )(x,
      ln_g.reshape(1, d).astype(jnp.float32),
      ln_b.reshape(1, d).astype(jnp.float32),
      qkv_w.astype(jnp.bfloat16),
      qkv_b.reshape(1, 3 * d).astype(jnp.float32),
      proj_w.astype(jnp.bfloat16),
      proj_b.reshape(1, d).astype(jnp.float32))


def ln_mlp_residual(x, gamma, beta, w1, b1, w2, b2, eps=1e-5, tm_cap=256):
    """x + FC2(GELU(FC1(LN(x))))."""
    m, d = x.shape
    f = w1.shape[1]
    tm = _pick_tm(m, tm_cap)
    xp, mp = _pad_rows(x, tm)
    # TODO(synk): for production dim_ff sizes, add an N/K grid axis with a VMEM
    # f32 accumulator so the fc1/fc2 weight tiles fit v7x's 64 MiB VMEM.
    cost = pl.CostEstimate(
        flops=int(4 * mp * d * f + 10 * mp * d), transcendentals=int(mp * f),
        bytes_accessed=int(2 * mp * d * 4 + 2 * d * f * 2))
    out = pl.pallas_call(
        functools.partial(_ln_mlp_res_kernel, eps=eps),
        out_shape=jax.ShapeDtypeStruct((mp, d), jnp.float32),
        grid=(mp // tm,),
        in_specs=[
            pl.BlockSpec((tm, d), lambda i: (i, 0)),
            pl.BlockSpec((1, d), lambda i: (0, 0)),
            pl.BlockSpec((1, d), lambda i: (0, 0)),
            pl.BlockSpec((d, f), lambda i: (0, 0)),
            pl.BlockSpec((1, f), lambda i: (0, 0)),
            pl.BlockSpec((f, d), lambda i: (0, 0)),
            pl.BlockSpec((1, d), lambda i: (0, 0)),
        ],
        out_specs=pl.BlockSpec((tm, d), lambda i: (i, 0)),
        compiler_params=_compiler_params(),
        cost_estimate=cost,
    )(xp,
      gamma.reshape(1, d).astype(jnp.float32),
      beta.reshape(1, d).astype(jnp.float32),
      w1.astype(jnp.bfloat16), b1.reshape(1, f).astype(jnp.float32),
      w2.astype(jnp.bfloat16), b2.reshape(1, d).astype(jnp.float32))
    return out[:m]


# ----------------------------------------------------------------------------
# Model glue (im2col / pos-embedding construction / block wiring)
# ----------------------------------------------------------------------------
def _im2col_s2(x_nhwc):
    """3x3, stride-2, pad-1 im2col: (B,H,W,C) -> (B*H/2*W/2, 9C)."""
    bsz, hgt, wid, cin = x_nhwc.shape
    ho, wo = hgt // 2, wid // 2
    xp = jnp.pad(x_nhwc, ((0, 0), (1, 1), (1, 1), (0, 0)))
    cols = [xp[:, dh:dh + 2 * ho:2, dw:dw + 2 * wo:2, :]
            for dh in range(3) for dw in range(3)]
    # TODO(synk): fuse the im2col tap extraction into the Pallas kernel for large
    # resolutions; at these spatial sizes the fused GEMM+activation+BN dominates.
    return jnp.concatenate(cols, axis=-1).reshape(bsz * ho * wo, 9 * cin), ho, wo


def downsample_conv_block(x_nhwc, w, b, bn_scale, bn_shift, ln=None,
                          out_dtype=jnp.float32):
    """Conv2d(k=3, s=2, p=1) -> LeakyReLU -> BatchNorm2d (eval, folded).
    If `ln = (gamma, beta, pos2d, eps)` the patch LayerNorm + pos-add is fused too.
    x_nhwc: (B, H, W, Cin); w: (3, 3, Cin, Cout)."""
    bsz = x_nhwc.shape[0]
    cin = x_nhwc.shape[-1]
    patches, ho, wo = _im2col_s2(x_nhwc)
    cout = w.shape[-1]
    # BatchNorm (eval) folding: positive BN scale commutes with LeakyReLU, so
    # scale is folded into W and b at trace time; only the shift stays in-kernel.
    w_mat = w.reshape(9 * cin, cout) * bn_scale[None, :]
    b_eff = b * bn_scale
    if ln is None:
        y = fused_linear(patches, w_mat, b_eff, shift=bn_shift, act="leaky_relu",
                         out_dtype=out_dtype)
    else:
        gamma, beta, pos2d, eps = ln
        y = fused_linear_ln_pos(patches, w_mat, b_eff, bn_shift, gamma, beta,
                                pos2d, eps=eps)
    return y.reshape(bsz, ho, wo, cout)


def get_2dpos_of_curr_ps_in_min_ps(height, width, patch_size, min_patch_size, scale):
    step = patch_size // min_patch_size
    xs = jnp.arange(0, width // min_patch_size, step, dtype=jnp.int32)
    ys = jnp.arange(0, height // min_patch_size, step, dtype=jnp.int32)
    gx, gy = jnp.meshgrid(xs, ys, indexing="ij")            # (Wp, Hp)
    coords = jnp.stack([gx, gy], axis=-1)                   # (Wp, Hp, 2)
    coords = coords.transpose(1, 0, 2).reshape(-1, 2)       # (Hp*Wp, 2): (x, y)
    n = coords.shape[0]
    scale_col = jnp.full((n, 1), scale, dtype=jnp.int32)
    return jnp.concatenate([scale_col, coords], axis=1)     # (N, 3)


def position_embedding_sine_points(coords, num_pos_feats, temperature=10000.0,
                                   normalize=True):
    """Sine pos-embedding on 2D point coordinates: (B, N, 2) -> (B, N, 2*num_pos_feats)."""
    # TODO(synk): PositionEmbeddingSine source was not provided with the module;
    # this is the standard DETR-style sine embedding applied to point coords.
    scale = 2.0 * math.pi
    x_embed = coords[..., 0].astype(jnp.float32)
    y_embed = coords[..., 1].astype(jnp.float32)
    if normalize:
        eps = 1e-6
        x_embed = x_embed / (jnp.max(x_embed) + eps) * scale
        y_embed = y_embed / (jnp.max(y_embed) + eps) * scale
    dim_t = jnp.arange(num_pos_feats, dtype=jnp.float32)
    dim_t = temperature ** (2.0 * jnp.floor(dim_t / 2.0) / num_pos_feats)
    pos_x = x_embed[..., None] / dim_t
    pos_y = y_embed[..., None] / dim_t
    bsz, n = coords.shape[0], coords.shape[1]
    pos_x = jnp.stack([jnp.sin(pos_x[..., 0::2]), jnp.cos(pos_x[..., 1::2])],
                      axis=-1).reshape(bsz, n, -1)
    pos_y = jnp.stack([jnp.sin(pos_y[..., 0::2]), jnp.cos(pos_y[..., 1::2])],
                      axis=-1).reshape(bsz, n, -1)
    return jnp.concatenate([pos_y, pos_x], axis=-1)


def transformer_block(p, x, n_heads):
    bsz, n, d = x.shape
    # (1) fused LN1 + QKV GEMM + multi-head attention + output proj + residual
    x = block_attention(x, p["ln1_g"], p["ln1_b"], p["qkv_w"], p["qkv_b"],
                        p["proj_w"], p["proj_b"], n_heads)
    # (2) fused LN2 + MLP + residual
    x2d = ln_mlp_residual(x.reshape(bsz * n, d), p["ln2_g"], p["ln2_b"],
                          p["fc1_w"], p["fc1_b"], p["fc2_w"], p["fc2_b"])
    return x2d.reshape(bsz, n, d)


def mrvit_forward(params, cfg, im_nchw, scale,
                  features=None, features_pos=None, upsampling_mask=None):
    """Mirrors MRVIT.forward (eval mode). `features*` / `upsampling_mask` are unused
    by the reference forward and ignored here too."""
    bsz, _, hgt, wid = im_nchw.shape
    ps = cfg["patch_size"]
    d = cfg["d_model"]
    x = jnp.transpose(im_nchw, (0, 2, 3, 1))                 # NCHW -> NHWC

    # position embedding (computed up-front so it can be fused into the last conv)
    pos = get_2dpos_of_curr_ps_in_min_ps(hgt, wid, ps, cfg["min_patch_size"], scale)
    pos = jnp.broadcast_to(pos[None], (bsz,) + pos.shape)    # (B, N, 3)
    pos_embed = position_embedding_sine_points(pos[:, :, 1:], d // 2)  # (B, N, D)

    # OverlapPatchEmbedding: log2(PS) DownSampleConvBlocks, then LayerNorm.
    # The patch LayerNorm and the positional-embedding add are fused into the
    # last conv block's GEMM epilogue; intermediate conv activations are bf16.
    conv_layers = params["conv_layers"]
    n_conv = len(conv_layers)
    for i, (w, b, bn_s, bn_t) in enumerate(conv_layers):
        if i == n_conv - 1:
            hp, wp = x.shape[1] // 2, x.shape[2] // 2
            x = downsample_conv_block(
                x, w, b, bn_s, bn_t,
                ln=(params["patch_ln_g"], params["patch_ln_b"],
                    pos_embed.reshape(bsz * hp * wp, d), 1e-5))
        else:
            x = downsample_conv_block(x, w, b, bn_s, bn_t, out_dtype=jnp.bfloat16)
    hp, wp = x.shape[1], x.shape[2]
    x = x.reshape(bsz, hp * wp, d)            # tokens == flatten(2).transpose(1,2)

    # Transformer blocks
    for blk in params["blocks"]:
        x = transformer_block(blk, x, cfg["n_heads"])

    out = layernorm(x.reshape(-1, d), params["out_ln_g"],
                    params["out_ln_b"]).reshape(bsz, hp * wp, d)

    # TODO(synk): self._out_features is never defined in MRVIT.__init__; using a fixed name.
    out_name = "mrvit_feat"
    outs = {
        out_name: out,
        out_name + "_pos": pos[:, :, 1:],
        out_name + "_spatial_shape": (hgt // ps, wid // ps),
        out_name + "_scale": pos[:, :, 0],
        "min_spatial_shape": (hgt // cfg["min_patch_size"], wid // cfg["min_patch_size"]),
    }
    return outs


# ----------------------------------------------------------------------------
# Deterministic parameter initialization (synthetic, mirrors __init__ shapes)
# ----------------------------------------------------------------------------
def init_params(key, cfg):
    d_model = cfg["d_model"]
    dim_ff = int(d_model * cfg["mlp_ratio"])
    keys = list(jax.random.split(key, 512))
    kidx = [0]

    def nxt():
        k = keys[kidx[0]]
        kidx[0] += 1
        return k

    def tn(shape, std=0.02):
        return (jax.random.truncated_normal(nxt(), -2.0, 2.0, shape, jnp.float32) * std)

    # OverlapPatchEmbedding conv stack
    n_conv = int(math.log2(cfg["patch_size"]))
    emb_dims = [int(d_model // 2 ** (n_conv - 1 - i)) for i in range(n_conv)]
    dims = [cfg["channels"]] + emb_dims
    bn_eps = 1e-5
    conv_layers = []
    for i in range(n_conv):
        w = tn((3, 3, dims[i], dims[i + 1]), std=0.1)
        b = tn((dims[i + 1],), std=0.02)
        # BatchNorm2d eval-mode fold with fresh-module stats: gamma=1, beta=0, mean=0, var=1
        bn_scale = jnp.full((dims[i + 1],), 1.0 / math.sqrt(1.0 + bn_eps), jnp.float32)
        bn_shift = jnp.zeros((dims[i + 1],), jnp.float32)
        conv_layers.append((w, b, bn_scale, bn_shift))

    params = {
        "conv_layers": conv_layers,
        "patch_ln_g": jnp.ones((d_model,), jnp.float32),
        "patch_ln_b": jnp.zeros((d_model,), jnp.float32),
        "out_ln_g": jnp.ones((d_model,), jnp.float32),
        "out_ln_b": jnp.zeros((d_model,), jnp.float32),
        "blocks": [],
    }
    for _ in range(cfg["n_layers"]):
        blk = {
            "ln1_g": jnp.ones((d_model,), jnp.float32),
            "ln1_b": jnp.zeros((d_model,), jnp.float32),
            "qkv_w": tn((d_model, 3 * d_model)),
            "qkv_b": jnp.zeros((3 * d_model,), jnp.float32),
            "proj_w": tn((d_model, d_model)),
            "proj_b": jnp.zeros((d_model,), jnp.float32),
            "ln2_g": jnp.ones((d_model,), jnp.float32),
            "ln2_b": jnp.zeros((d_model,), jnp.float32),
            "fc1_w": tn((d_model, dim_ff)),
            "fc1_b": jnp.zeros((dim_ff,), jnp.float32),
            "fc2_w": tn((dim_ff, d_model)),
            "fc2_b": jnp.zeros((d_model,), jnp.float32),
        }
        params["blocks"].append(blk)
    return params


# ----------------------------------------------------------------------------
if __name__ == "__main__":
    cfg = dict(
        patch_size=4,        # patch_sizes=[4] -> patch_size = patch_sizes[-1]
        n_layers=2,
        d_model=32,
        n_heads=4,
        mlp_ratio=4.0,
        channels=3,
        min_patch_size=4,
    )
    key = jax.random.PRNGKey(0)
    kp, kx = jax.random.split(key)
    params = init_params(kp, cfg)

    B, H, W = 2, 32, 32
    im = jax.random.normal(kx, (B, cfg["channels"], H, W), jnp.float32)  # NCHW input
    scale = 0

    outs = mrvit_forward(params, cfg, im, scale)
    jax.block_until_ready((outs["mrvit_feat"], outs["mrvit_feat_pos"],
                           outs["mrvit_feat_scale"]))
    assert outs["mrvit_feat"].shape == (B, (H // 4) * (W // 4), cfg["d_model"])
    assert bool(jnp.all(jnp.isfinite(outs["mrvit_feat"])))
    print("KERNEL_OK")
</pallas_src>

<mosaic_0001>
module attributes {stable_mosaic.version = 11 : i64} {
  func.func @_gemm_epilogue_kernel(%arg0: i32, %arg1: memref<256x27xbf16, #tpu.memory_space<vmem>>, %arg2: memref<27x16xbf16, #tpu.memory_space<vmem>>, %arg3: memref<1x16xf32, #tpu.memory_space<vmem>>, %arg4: memref<1x16xf32, #tpu.memory_space<vmem>>, %arg5: memref<256x16xbf16, #tpu.memory_space<vmem>>) attributes {dimension_semantics = [#tpu.dimension_semantics<parallel>], iteration_bounds = array<i64: 2>, scalar_prefetch = 0 : i64, scratch_operands = 0 : i64, tpu.core_type = #tpu.core_type<tc>, window_params = [{transform_indices = @transform_0, window_bounds = array<i64: 256, 27>}, {pipeline_mode = #tpu.pipeline_mode<synchronous>, transform_indices = @transform_1, window_bounds = array<i64: 27, 16>}, {pipeline_mode = #tpu.pipeline_mode<synchronous>, transform_indices = @transform_2, window_bounds = array<i64: 1, 16>}, {pipeline_mode = #tpu.pipeline_mode<synchronous>, transform_indices = @transform_3, window_bounds = array<i64: 1, 16>}, {transform_indices = @transform_4, window_bounds = array<i64: 256, 16>}]} {
    %c0 = arith.constant 0 : index
    %c0_0 = arith.constant 0 : index
    %0 = vector.load %arg1[%c0, %c0_0] : memref<256x27xbf16, #tpu.memory_space<vmem>>, vector<256x27xbf16>
    %c0_1 = arith.constant 0 : index
    %c0_2 = arith.constant 0 : index
    %1 = vector.load %arg2[%c0_1, %c0_2] : memref<27x16xbf16, #tpu.memory_space<vmem>>, vector<27x16xbf16>
    %cst = arith.constant dense<0.000000e+00> : vector<256x16xf32>
    %2 = tpu.matmul %0, %1, %cst {dimension_numbers = #tpu.dot_dimension_numbers<[1], [0], [0], [1], [0, 0, 1, 1], [], []>} : vector<256x27xbf16>, vector<27x16xbf16>, vector<256x16xf32> -> vector<256x16xf32>
    %c0_3 = arith.constant 0 : index
    %c0_4 = arith.constant 0 : index
    %3 = vector.load %arg3[%c0_3, %c0_4] : memref<1x16xf32, #tpu.memory_space<vmem>>, vector<1x16xf32>
    %4 = vector.broadcast %3 : vector<1x16xf32> to vector<256x16xf32>
    %5 = arith.addf %2, %4 : vector<256x16xf32>
    %cst_5 = arith.constant 0.000000e+00 : f32
    %6 = vector.broadcast %cst_5 : f32 to vector<256x16xf32>
    %7 = arith.cmpf oge, %5, %6 : vector<256x16xf32>
    %cst_6 = arith.constant 0.00999999977 : f32
    %8 = vector.broadcast %cst_6 : f32 to vector<256x16xf32>
    %9 = arith.mulf %8, %5 : vector<256x16xf32>
    %10 = arith.select %7, %5, %9 : vector<256x16xi1>, vector<256x16xf32>
    %c0_7 = arith.constant 0 : index
    %c0_8 = arith.constant 0 : index
    %11 = vector.load %arg4[%c0_7, %c0_8] : memref<1x16xf32, #tpu.memory_space<vmem>>, vector<1x16xf32>
    %12 = vector.broadcast %11 : vector<1x16xf32> to vector<256x16xf32>
    %13 = arith.addf %10, %12 : vector<256x16xf32>
    %14 = arith.truncf %13 : vector<256x16xf32> to vector<256x16xbf16>
    %c0_9 = arith.constant 0 : index
    %c0_10 = arith.constant 0 : index
    %15 = vector.load %arg5[%c0_9, %c0_10] : memref<256x16xbf16, #tpu.memory_space<vmem>>, vector<256x16xbf16>
    tpu.vector_store %arg5[%c0_9, %c0_10], %14 {strides = array<i32>} : memref<256x16xbf16, #tpu.memory_space<vmem>>, vector<256x16xbf16>,
    return
  }
  func.func @transform_0(%arg0: i32) -> (i32, i32) {
    %c0_i32 = arith.constant 0 : i32
    %c0_i32_0 = arith.constant 0 : i32
    return %arg0, %c0_i32 : i32, i32
  }
  func.func @transform_1(%arg0: i32) -> (i32, i32) {
    %c0_i32 = arith.constant 0 : i32
    %c0_i32_0 = arith.constant 0 : i32
    %c0_i32_1 = arith.constant 0 : i32
    return %c0_i32, %c0_i32_0 : i32, i32
  }
  func.func @transform_2(%arg0: i32) -> (i32, i32) {
    %c0_i32 = arith.constant 0 : i32
    %c0_i32_0 = arith.constant 0 : i32
    %c0_i32_1 = arith.constant 0 : i32
    return %c0_i32, %c0_i32_0 : i32, i32
  }
  func.func @transform_3(%arg0: i32) -> (i32, i32) {
    %c0_i32 = arith.constant 0 : i32
    %c0_i32_0 = arith.constant 0 : i32
    %c0_i32_1 = arith.constant 0 : i32
    return %c0_i32, %c0_i32_0 : i32, i32
  }
  func.func @transform_4(%arg0: i32) -> (i32, i32) {
    %c0_i32 = arith.constant 0 : i32
    %c0_i32_0 = arith.constant 0 : i32
    return %arg0, %c0_i32 : i32, i32
  }
}

</mosaic_0001>

<bundles_post_ra>
// kernel: tpu_custom_call.1
= control target key start
LH: loop header
LB: loop body
LE: loop exit
PB: predicated region body
PF: predicated region fallthrough
CT: control target
= control target key end

     0   :  { %s1135_s15 = smov 0   ;;  %s1342_s0 = inlined_call_operand.vmem [shape: bf16[512,27], index: 0, kind: input, shape index: {}]   ;;  %s1343_s1 = inlined_call_operand.vmem [shape: bf16[27,16], index: 1, kind: input, shape index: {}]   ;;  %s1344_s2 = inlined_call_operand.vmem [shape: f32[1,16], index: 2, kind: input, shape index: {}]   ;;  %s1345_s3 = inlined_call_operand.vmem [shape: f32[1,16], index: 3, kind: input, shape index: {}]   ;;  %s1346_s4 = inlined_call_operand.vmem [shape: bf16[512,16], index: 4, kind: output, shape index: {}]  }
   0x1 LB: > { %s905_s16 = sadd.s32 4294967295, %s1107_s15   ;;  %p909_p0 = scmp.ge.s32.totalorder %s1107_s15, 1  ;;  %s1107_s15 = sphi %s1135_s15, %s14_s15  }
   0x2   : > { %p163_p1 = scmp.lt.s32.totalorder %s1107_s15, 3 }
   0x4   : > { %p164_p2 = pnand %p909_p0, %p163_p1 }
   0x5   : > { %s910_s19 = sshll.u32 (!%p164_p2), %s905_s16, 5 }
   0x6   : > { %167 = sbr.rel (%p164_p2) target bundleno = 272 (0x110), region = 36  ;;  %p190_p3 = scmp.lt.s32.totalorder (!%p164_p2), %s910_s19, 63 }
   0xb   : > { %v1083_v0 = vld [vmem:[%s1343_s1 + $0x8] sm:$0x3f]   ;;  %vm385_vm0 = vcmask 1044480   ;;  %vm386_vm1 = vcmask 1045504   ;;  %v1109_v1 = vmov 65535   ;;  %v1084_v5 = vld [vmem:[%s1343_s1] sm:$0xff]  }
   0xc   : > { %v387_v2 = vsel %vm385_vm0, 4294967295, %v1109_v1  ;;  %s1348_s19 = smov (!%p190_p3, %s910_s19), 63  ;;  %vm336_vm2 = vcmask 220160   ;;  %v1194_v22 = vld [vmem:[%s1344_s2] ss:$0 sm:$0xff]  ;;  %vm816_vm5 = vcmask 125952  }
   0xd   : > { %v388_v3 = vsel %vm386_vm1, %v387_v2, 0  ;;  %s911_s22 = sshll.u32 %s1348_s19, 2  ;;  %v1201_v27 = vld [vmem:[%s1345_s3] ss:$0 sm:$0xff] }
   0xe   : > { %v390_v4 = vand.u32 %v1083_v0, %v388_v3  ;;  %s1157_s25 = scalar_lea.vmem %s1342_s0, %s911_s22  ;;  %s1214_s6 = scalar_lea.vmem %s1346_s4, %s911_s22 }
   0xf   : > { %v1085_v6 = vld [vmem:[%s1157_s25] sm:$0xff]   ;;  %v1087_v8 = vld [vmem:[%s1157_s25 + $0x8] sm:$0xff]   ;;  %v1089_v10 = vld [vmem:[%s1157_s25 + $0x10] sm:$0xff]  }
  0x10   : > { %1034 = vmatprep.subr.bf16.mxu0 %v390_v4  ;;  %1070 = vmatprep.subr.bf16.mxu1 %v390_v4  ;;  %v1086_v7 = vld [vmem:[%s1157_s25 + $0x40] sm:$0xff]   ;;  %v1088_v9 = vld [vmem:[%s1157_s25 + $0x48] sm:$0xff]   ;;  %v1090_v11 = vld [vmem:[%s1157_s25 + $0x50] sm:$0xff]  }
  0x11   : > { %1035 = vmatpush3.bf16.msra.mxu0 %v390_v4  ;;  %1072 = vmatpush3.bf16.msra.mxu1 %v390_v4  ;;  %v1091_v12 = vld [vmem:[%s1157_s25 + $0x18] sm:$0xff]   ;;  %v1093_v14 = vld [vmem:[%s1157_s25 + $0x20] sm:$0xff]   ;;  %v1095_v16 = vld [vmem:[%s1157_s25 + $0x28] sm:$0xff]  }
  0x12   : > { %1036 = vmatprep.subr.bf16.mxu0 %v1084_v5  ;;  %1071 = vmatprep.subr.bf16.mxu1 %v1084_v5  ;;  %v1092_v13 = vld [vmem:[%s1157_s25 + $0x58] sm:$0xff]   ;;  %v1094_v15 = vld [vmem:[%s1157_s25 + $0x60] sm:$0xff]   ;;  %v1096_v17 = vld [vmem:[%s1157_s25 + $0x68] sm:$0xff]  }
  0x13   : > { %1038 = vmatprep.mubr.msk.bf16.mxu0 %vm336_vm2, %v1085_v6  ;;  %1054 = vmatprep.mubr.msk.bf16.mxu1 %vm336_vm2, %v1086_v7  ;;  %v1097_v18 = vld [vmem:[%s1157_s25 + $0x30] sm:$0xff]   ;;  %v1099_v20 = vld [vmem:[%s1157_s25 + $0x38] sm:$0xff]  }
  0x14   : > { %v1098_v19 = vld [vmem:[%s1157_s25 + $0x70] sm:$0xff]   ;;  %v1100_v21 = vld [vmem:[%s1157_s25 + $0x78] sm:$0xff]  }
  0x15   : > { %1037 = vmatpush3.bf16.msra.mxu0 %v1084_v5  ;;  %1073 = vmatpush3.bf16.msra.mxu1 %v1084_v5 }
  0x18   : > { %1039 = vmatmul.mubr.msk.bf16.vlgmr.msra.gmra.mxu0 %vm336_vm2, %v1087_v8  ;;  %1055 = vmatmul.mubr.msk.bf16.vlgmr.msra.gmra.mxu1 %vm336_vm2, %v1088_v9 }
  0x19   : > { %1042 = vmatprep.mubr.msk.bf16.mxu0 %vm336_vm2, %v1089_v10  ;;  %1058 = vmatprep.mubr.msk.bf16.mxu1 %vm336_vm2, %v1090_v11 }
  0x20   : > { %1043 = vmatmul.mubr.msk.bf16.gmra.mxu0 %vm336_vm2, %v1091_v12  ;;  %1059 = vmatmul.mubr.msk.bf16.gmra.mxu1 %vm336_vm2, %v1092_v13 }
  0x21   : > { %1046 = vmatprep.mubr.msk.bf16.mxu0 %vm336_vm2, %v1093_v14  ;;  %1062 = vmatprep.mubr.msk.bf16.mxu1 %vm336_vm2, %v1094_v15 }
  0x28   : > { %1047 = vmatmul.mubr.msk.bf16.gmra.mxu0 %vm336_vm2, %v1095_v16  ;;  %1063 = vmatmul.mubr.msk.bf16.gmra.mxu1 %vm336_vm2, %v1096_v17 }
  0x29   : > { %1050 = vmatprep.mubr.msk.bf16.mxu0 %vm336_vm2, %v1097_v18  ;;  %1066 = vmatprep.mubr.msk.bf16.mxu1 %vm336_vm2, %v1098_v19 }
  0x30   : > { %1051 = vmatmul.mubr.msk.bf16.gmra.mxu0 %vm336_vm2, %v1099_v20  ;;  %1067 = vmatmul.mubr.msk.bf16.gmra.mxu1 %vm336_vm2, %v1100_v21 }
  0xd8   : > { %v1040_v23 = vpop.f32.mrf.mxu0  ;;  %v1056_v24 = vpop.f32.mrf.mxu1 }
  0xd9   : > { %v435_v25 = vadd.f32 %v1040_v23, %v1194_v22  ;;  %v499_v26 = vadd.f32 %v1056_v24, %v1194_v22 }
  0xda   : > { %v426_v28 = vpop.f32.mrf.mxu0  ;;  %v490_v29 = vpop.f32.mrf.mxu1 }
  0xdb   : > { %vm555_vm3 = vcmp.ge.f32.partialorder %v435_v25, 0.0  ;;  %v587_v30 = vmul.f32 0.01, %v435_v25  ;;  %vm571_vm4 = vcmp.ge.f32.partialorder %v499_v26, 0.0  ;;  %v603_v31 = vmul.f32 0.01, %v499_v26 }
  0xdc   : > { %v427_v32 = vadd.f32 %v1194_v22, %v426_v28  ;;  %v491_v33 = vadd.f32 %v1194_v22, %v490_v29  ;;  %v1041_v34 = vpop.f32.mrf.mxu0  ;;  %v1057_v35 = vpop.f32.mrf.mxu1 }
  0xdd   : > { %v619_v36 = vsel %vm555_vm3, %v435_v25, %v587_v30  ;;  %v635_v37 = vsel %vm571_vm4, %v499_v26, %v603_v31  ;;  %v438_v38 = vadd.f32 %v1041_v34, %v1194_v22  ;;  %v502_v39 = vadd.f32 %v1057_v35, %v1194_v22 }
  0xde   : > { %v658_v40 = vadd.f32 %v1201_v27, %v619_v36  ;;  %v674_v41 = vadd.f32 %v1201_v27, %v635_v37  ;;  %vm553_vm6 = vcmp.ge.f32.partialorder %v427_v32, 0.0  ;;  %v585_v42 = vmul.f32 0.01, %v427_v32  ;;  %v429_v43 = vpop.f32.mrf.mxu0  ;;  %v493_v44 = vpop.f32.mrf.mxu1 }
  0xdf   : > { %vm569_vm7 = vcmp.ge.f32.partialorder %v491_v33, 0.0  ;;  %v601_v45 = vmul.f32 0.01, %v491_v33  ;;  %vm556_vm8 = vcmp.ge.f32.partialorder %v438_v38, 0.0  ;;  %v588_v46 = vmul.f32 0.01, %v438_v38 }
  0xe0   : > { %v986_v47 = vpack.c.bf16 %v658_v40, %v658_v40  ;;  %v1002_v48 = vpack.c.bf16 %v674_v41, %v674_v41  ;;  %v617_v49 = vsel %vm553_vm6, %v427_v32, %v585_v42  ;;  %vm572_vm9 = vcmp.ge.f32.partialorder %v502_v39, 0.0  ;;  %v1044_v50 = vpop.f32.mrf.mxu0  ;;  %v1060_v51 = vpop.f32.mrf.mxu1 }
  0xe1   : > { %v656_v52 = vadd.f32 %v1201_v27, %v617_v49  ;;  %v633_v53 = vsel %vm569_vm7, %v491_v33, %v601_v45  ;;  %v620_v54 = vsel %vm556_vm8, %v438_v38, %v588_v46  ;;  %v604_v55 = vmul.f32 0.01, %v502_v39 }
  0xe2   : > { %819 = vst.msk [vmem:[%s1214_s6 + $0x8] sm:$0xf] %vm816_vm5, %v986_v47  ;;  %835 = vst.msk [vmem:[%s1214_s6 + $0x48] sm:$0xf] %vm816_vm5, %v1002_v48  ;;  %v672_v56 = vadd.f32 %v1201_v27, %v633_v53  ;;  %v659_v57 = vadd.f32 %v1201_v27, %v620_v54  ;;  %v430_v58 = vadd.f32 %v1194_v22, %v429_v43  ;;  %v442_v60 = vpop.f32.mrf.mxu0  ;;  %v506_v61 = vpop.f32.mrf.mxu1 }
  0xe3   : > { %v494_v59 = vadd.f32 %v1194_v22, %v493_v44  ;;  %v984_v62 = vpack.c.bf16 %v656_v52, %v656_v52  ;;  %v636_v63 = vsel %vm572_vm9, %v502_v39, %v604_v55  ;;  %v451_v0 = vadd.f32 %v1044_v50, %v1194_v22 }
  0xe4   : > { %v515_v1 = vadd.f32 %v1060_v51, %v1194_v22  ;;  %v1000_v2 = vpack.c.bf16 %v672_v56, %v672_v56  ;;  %v987_v3 = vpack.c.bf16 %v659_v57, %v659_v57  ;;  %v675_v4 = vadd.f32 %v1201_v27, %v636_v63  ;;  %v1045_v5 = vpop.f32.mrf.mxu0  ;;  %v1061_v6 = vpop.f32.mrf.mxu1 }
  0xe5   : > { %vm554_vm10 = vcmp.ge.f32.partialorder %v430_v58, 0.0  ;;  %817 = vst.msk [vmem:[%s1214_s6] sm:$0xf] %vm816_vm5, %v984_v62  ;;  %v586_v7 = vmul.f32 0.01, %v430_v58  ;;  %vm570_vm11 = vcmp.ge.f32.partialorder %v494_v59, 0.0  ;;  %v443_v16 = vadd.f32 %v1194_v22, %v442_v60 }
  0xe6   : > { %v602_v8 = vmul.f32 0.01, %v494_v59  ;;  %vm559_vm12 = vcmp.ge.f32.partialorder %v451_v0, 0.0  ;;  %833 = vst.msk [vmem:[%s1214_s6 + $0x40] sm:$0xf] %vm816_vm5, %v1000_v2  ;;  %v1003_v9 = vpack.c.bf16 %v675_v4, %v675_v4  ;;  %vm575_vm13 = vcmp.ge.f32.partialorder %v515_v1, 0.0  ;;  %v445_v12 = vpop.f32.mrf.mxu0  ;;  %v509_v13 = vpop.f32.mrf.mxu1 }
  0xe7   : > { %820 = vst.msk [vmem:[%s1214_s6 + $0xc] sm:$0xf] %vm816_vm5, %v987_v3  ;;  %v591_v10 = vmul.f32 0.01, %v451_v0  ;;  %v607_v11 = vmul.f32 0.01, %v515_v1  ;;  %v618_v14 = vsel %vm554_vm10, %v430_v58, %v586_v7  ;;  %v507_v17 = vadd.f32 %v1194_v22, %v506_v61 }
  0xe8   : > { %v634_v15 = vsel %vm570_vm11, %v494_v59, %v602_v8  ;;  %836 = vst.msk [vmem:[%s1214_s6 + $0x4c] sm:$0xf] %vm816_vm5, %v1003_v9  ;;  %v657_v18 = vadd.f32 %v1201_v27, %v618_v14  ;;  %v1048_v23 = vpop.f32.mrf.mxu0  ;;  %v1064_v24 = vpop.f32.mrf.mxu1  ;;  %vm557_vm14 = vcmp.ge.f32.partialorder %v443_v16, 0.0  ;;  %v589_v28 = vmul.f32 0.01, %v443_v16 }
  0xe9   : > { %v673_v19 = vadd.f32 %v1201_v27, %v634_v15  ;;  %v623_v20 = vsel %vm559_vm12, %v451_v0, %v591_v10  ;;  %v639_v21 = vsel %vm575_vm13, %v515_v1, %v607_v11  ;;  %vm573_vm15 = vcmp.ge.f32.partialorder %v507_v17, 0.0 }
  0xea   : > { %v662_v25 = vadd.f32 %v1201_v27, %v623_v20  ;;  %v678_v26 = vadd.f32 %v1201_v27, %v639_v21  ;;  %v985_v29 = vpack.c.bf16 %v657_v18, %v657_v18  ;;  %v605_v31 = vmul.f32 0.01, %v507_v17  ;;  %v458_v32 = vpop.f32.mrf.mxu0  ;;  %v522_v33 = vpop.f32.mrf.mxu1 }
  0xeb   : > { %v1001_v30 = vpack.c.bf16 %v673_v19, %v673_v19  ;;  %v621_v36 = vsel %vm557_vm14, %v443_v16, %v589_v28  ;;  %v454_v37 = vadd.f32 %v1045_v5, %v1194_v22  ;;  %v518_v40 = vadd.f32 %v1061_v6, %v1194_v22 }
  0xec   : > { %v990_v34 = vpack.c.bf16 %v662_v25, %v662_v25  ;;  %v1006_v35 = vpack.c.bf16 %v678_v26, %v678_v26  ;;  %818 = vst.msk [vmem:[%s1214_s6 + $0x4] sm:$0xf] %vm816_vm5, %v985_v29  ;;  %v660_v38 = vadd.f32 %v1201_v27, %v621_v36  ;;  %v637_v39 = vsel %vm573_vm15, %v507_v17, %v605_v31  ;;  %v1049_v45 = vpop.f32.mrf.mxu0  ;;  %v1065_v48 = vpop.f32.mrf.mxu1 }
  0xed   : > { %834 = vst.msk [vmem:[%s1214_s6 + $0x44] sm:$0xf] %vm816_vm5, %v1001_v30  ;;  %v446_v41 = vadd.f32 %v1194_v22, %v445_v12  ;;  %v676_v42 = vadd.f32 %v1201_v27, %v637_v39  ;;  %vm560_vm0 = vcmp.ge.f32.partialorder %v454_v37, 0.0  ;;  %v592_v43 = vmul.f32 0.01, %v454_v37 }
  0xee   : > { %823 = vst.msk [vmem:[%s1214_s6 + $0x18] sm:$0xf] %vm816_vm5, %v990_v34  ;;  %839 = vst.msk [vmem:[%s1214_s6 + $0x58] sm:$0xf] %vm816_vm5, %v1006_v35  ;;  %v510_v44 = vadd.f32 %v1194_v22, %v509_v13  ;;  %v988_v46 = vpack.c.bf16 %v660_v38, %v660_v38  ;;  %vm576_vm1 = vcmp.ge.f32.partialorder %v518_v40, 0.0  ;;  %v467_v55 = vadd.f32 %v1048_v23, %v1194_v22  ;;  %v461_v60 = vpop.f32.mrf.mxu0  ;;  %v525_v0 = vpop.f32.mrf.mxu1 }
  0xef   : > { %v608_v47 = vmul.f32 0.01, %v518_v40  ;;  %vm558_vm2 = vcmp.ge.f32.partialorder %v446_v41, 0.0  ;;  %v1004_v49 = vpack.c.bf16 %v676_v42, %v676_v42  ;;  %v624_v50 = vsel %vm560_vm0, %v454_v37, %v592_v43 }
  0xf0   : > { %v590_v51 = vmul.f32 0.01, %v446_v41  ;;  %vm574_vm3 = vcmp.ge.f32.partialorder %v510_v44, 0.0  ;;  %821 = vst.msk [vmem:[%s1214_s6 + $0x10] sm:$0xf] %vm816_vm5, %v988_v46  ;;  %v663_v52 = vadd.f32 %v1201_v27, %v624_v50  ;;  %v531_v58 = vadd.f32 %v1064_v24, %v1194_v22  ;;  %v1052_v11 = vpop.f32.mrf.mxu0  ;;  %v1068_v16 = vpop.f32.mrf.mxu1 }
  0xf1   : > { %v640_v53 = vsel %vm576_vm1, %v518_v40, %v608_v47  ;;  %v606_v54 = vmul.f32 0.01, %v510_v44  ;;  %837 = vst.msk [vmem:[%s1214_s6 + $0x50] sm:$0xf] %vm816_vm5, %v1004_v49  ;;  %v459_v59 = vadd.f32 %v1194_v22, %v458_v32  ;;  %vm563_vm4 = vcmp.ge.f32.partialorder %v467_v55, 0.0 }
  0xf2   : > { %v679_v56 = vadd.f32 %v1201_v27, %v640_v53  ;;  %v622_v57 = vsel %vm558_vm2, %v446_v41, %v590_v51  ;;  %v991_v61 = vpack.c.bf16 %v663_v52, %v663_v52  ;;  %v595_v3 = vmul.f32 0.01, %v467_v55  ;;  %v474_v28 = vpop.f32.mrf.mxu0 }
  0xf3   : > { %v661_v62 = vadd.f32 %v1201_v27, %v622_v57  ;;  %v638_v63 = vsel %vm574_vm3, %v510_v44, %v606_v54  ;;  %vm579_vm6 = vcmp.ge.f32.partialorder %v531_v58, 0.0  ;;  %v611_v5 = vmul.f32 0.01, %v531_v58 }
  0xf4   : > { %v1007_v1 = vpack.c.bf16 %v679_v56, %v679_v56  ;;  %v677_v2 = vadd.f32 %v1201_v27, %v638_v63  ;;  %824 = vst.msk [vmem:[%s1214_s6 + $0x1c] sm:$0xf] %vm816_vm5, %v991_v61  ;;  %vm561_vm7 = vcmp.ge.f32.partialorder %v459_v59, 0.0  ;;  %v593_v6 = vmul.f32 0.01, %v459_v59  ;;  %v1053_v43 = vpop.f32.mrf.mxu0 }
  0xf5   : > { %v989_v4 = vpack.c.bf16 %v661_v62, %v661_v62  ;;  %v627_v8 = vsel %vm563_vm4, %v467_v55, %v595_v3  ;;  %v523_v9 = vadd.f32 %v1194_v22, %v522_v33  ;;  %v470_v10 = vadd.f32 %v1049_v45, %v1194_v22  ;;  %v538_v33 = vpop.f32.mrf.mxu1 }
  0xf6   : > { %840 = vst.msk [vmem:[%s1214_s6 + $0x5c] sm:$0xf] %vm816_vm5, %v1007_v1  ;;  %v1005_v7 = vpack.c.bf16 %v677_v2, %v677_v2  ;;  %v666_v12 = vadd.f32 %v1201_v27, %v627_v8  ;;  %v643_v13 = vsel %vm579_vm6, %v531_v58, %v611_v5  ;;  %v625_v14 = vsel %vm561_vm7, %v459_v59, %v593_v6  ;;  %v477_v59 = vpop.f32.mrf.mxu0 }
  0xf7   : > { %822 = vst.msk [vmem:[%s1214_s6 + $0x14] sm:$0xf] %vm816_vm5, %v989_v4  ;;  %v534_v15 = vadd.f32 %v1065_v48, %v1194_v22  ;;  %v682_v17 = vadd.f32 %v1201_v27, %v643_v13  ;;  %v664_v18 = vadd.f32 %v1201_v27, %v625_v14  ;;  %vm577_vm8 = vcmp.ge.f32.partialorder %v523_v9, 0.0  ;;  %v1069_v47 = vpop.f32.mrf.mxu1 }
  0xf8   : > { %838 = vst.msk [vmem:[%s1214_s6 + $0x54] sm:$0xf] %vm816_vm5, %v1005_v7  ;;  %v609_v19 = vmul.f32 0.01, %v523_v9  ;;  %v994_v20 = vpack.c.bf16 %v666_v12, %v666_v12  ;;  %vm564_vm9 = vcmp.ge.f32.partialorder %v470_v10, 0.0  ;;  %v462_v31 = vadd.f32 %v1194_v22, %v461_v60 }
  0xf9   : > { %v596_v21 = vmul.f32 0.01, %v470_v10  ;;  %vm580_vm10 = vcmp.ge.f32.partialorder %v534_v15, 0.0  ;;  %v1010_v23 = vpack.c.bf16 %v682_v17, %v682_v17  ;;  %v992_v24 = vpack.c.bf16 %v664_v18, %v664_v18  ;;  %v541_v63 = vpop.f32.mrf.mxu1 }
  0xfa   : > { %v641_v25 = vsel %vm577_vm8, %v523_v9, %v609_v19  ;;  %v612_v26 = vmul.f32 0.01, %v534_v15  ;;  %827 = vst.msk [vmem:[%s1214_s6 + $0x28] sm:$0xf] %vm816_vm5, %v994_v20  ;;  %v526_v32 = vadd.f32 %v1194_v22, %v525_v0  ;;  %v483_v36 = vadd.f32 %v1052_v11, %v1194_v22 }
  0xfb   : > { %v680_v29 = vadd.f32 %v1201_v27, %v641_v25  ;;  %v628_v30 = vsel %vm564_vm9, %v470_v10, %v596_v21  ;;  %843 = vst.msk [vmem:[%s1214_s6 + $0x68] sm:$0xf] %vm816_vm5, %v1010_v23  ;;  %825 = vst.msk [vmem:[%s1214_s6 + $0x20] sm:$0xf] %vm816_vm5, %v992_v24  ;;  %v547_v37 = vadd.f32 %v1068_v16, %v1194_v22  ;;  %vm562_vm11 = vcmp.ge.f32.partialorder %v462_v31, 0.0 }
  0xfc   : > { %v667_v34 = vadd.f32 %v1201_v27, %v628_v30  ;;  %v644_v35 = vsel %vm580_vm10, %v534_v15, %v612_v26  ;;  %v594_v40 = vmul.f32 0.01, %v462_v31  ;;  %vm578_vm12 = vcmp.ge.f32.partialorder %v526_v32, 0.0 }
  0xfd   : > { %v1008_v38 = vpack.c.bf16 %v680_v29, %v680_v29  ;;  %v683_v39 = vadd.f32 %v1201_v27, %v644_v35  ;;  %v610_v42 = vmul.f32 0.01, %v526_v32  ;;  %vm567_vm13 = vcmp.ge.f32.partialorder %v483_v36, 0.0 }
  0xfe   : > { %v995_v41 = vpack.c.bf16 %v667_v34, %v667_v34  ;;  %v626_v45 = vsel %vm562_vm11, %v462_v31, %v594_v40  ;;  %v599_v46 = vmul.f32 0.01, %v483_v36  ;;  %vm583_vm14 = vcmp.ge.f32.partialorder %v547_v37, 0.0 }
  0xff   : > { %841 = vst.msk [vmem:[%s1214_s6 + $0x60] sm:$0xf] %vm816_vm5, %v1008_v38  ;;  %v1011_v44 = vpack.c.bf16 %v683_v39, %v683_v39  ;;  %v665_v48 = vadd.f32 %v1201_v27, %v626_v45  ;;  %v642_v49 = vsel %vm578_vm12, %v526_v32, %v610_v42  ;;  %v615_v50 = vmul.f32 0.01, %v547_v37 }
 0x100   : > { %828 = vst.msk [vmem:[%s1214_s6 + $0x2c] sm:$0xf] %vm816_vm5, %v995_v41  ;;  %v475_v51 = vadd.f32 %v1194_v22, %v474_v28  ;;  %v681_v52 = vadd.f32 %v1201_v27, %v642_v49  ;;  %v631_v53 = vsel %vm567_vm13, %v483_v36, %v599_v46  ;;  %v539_v54 = vadd.f32 %v1194_v22, %v538_v33 }
 0x101   : > { %844 = vst.msk [vmem:[%s1214_s6 + $0x6c] sm:$0xf] %vm816_vm5, %v1011_v44  ;;  %v486_v55 = vadd.f32 %v1053_v43, %v1194_v22  ;;  %v993_v56 = vpack.c.bf16 %v665_v48, %v665_v48  ;;  %v670_v57 = vadd.f32 %v1201_v27, %v631_v53  ;;  %v647_v58 = vsel %vm583_vm14, %v547_v37, %v615_v50 }
 0x102   : > { %vm565_vm15 = vcmp.ge.f32.partialorder %v475_v51, 0.0  ;;  %v1009_v60 = vpack.c.bf16 %v681_v52, %v681_v52  ;;  %v686_v61 = vadd.f32 %v1201_v27, %v647_v58  ;;  %v597_v62 = vmul.f32 0.01, %v475_v51 }
 0x103   : > { %vm581_vm0 = vcmp.ge.f32.partialorder %v539_v54, 0.0  ;;  %826 = vst.msk [vmem:[%s1214_s6 + $0x24] sm:$0xf] %vm816_vm5, %v993_v56  ;;  %v998_v0 = vpack.c.bf16 %v670_v57, %v670_v57  ;;  %v613_v1 = vmul.f32 0.01, %v539_v54  ;;  %vm568_vm1 = vcmp.ge.f32.partialorder %v486_v55, 0.0 }
 0x104   : > { %v600_v2 = vmul.f32 0.01, %v486_v55  ;;  %842 = vst.msk [vmem:[%s1214_s6 + $0x64] sm:$0xf] %vm816_vm5, %v1009_v60  ;;  %v1014_v3 = vpack.c.bf16 %v686_v61, %v686_v61  ;;  %v629_v4 = vsel %vm565_vm15, %v475_v51, %v597_v62  ;;  %v550_v5 = vadd.f32 %v1069_v47, %v1194_v22 }
 0x105   : > { %v478_v6 = vadd.f32 %v1194_v22, %v477_v59  ;;  %831 = vst.msk [vmem:[%s1214_s6 + $0x38] sm:$0xf] %vm816_vm5, %v998_v0  ;;  %v668_v7 = vadd.f32 %v1201_v27, %v629_v4  ;;  %v645_v8 = vsel %vm581_vm0, %v539_v54, %v613_v1  ;;  %v542_v10 = vadd.f32 %v1194_v22, %v541_v63 }
 0x106   : > { %v632_v9 = vsel %vm568_vm1, %v486_v55, %v600_v2  ;;  %847 = vst.msk [vmem:[%s1214_s6 + $0x78] sm:$0xf] %vm816_vm5, %v1014_v3  ;;  %v684_v11 = vadd.f32 %v1201_v27, %v645_v8  ;;  %vm584_vm2 = vcmp.ge.f32.partialorder %v550_v5, 0.0  ;;  %v616_v13 = vmul.f32 0.01, %v550_v5 }
 0x107   : > { %v671_v12 = vadd.f32 %v1201_v27, %v632_v9  ;;  %v996_v14 = vpack.c.bf16 %v668_v7, %v668_v7  ;;  %vm566_vm3 = vcmp.ge.f32.partialorder %v478_v6, 0.0  ;;  %v598_v15 = vmul.f32 0.01, %v478_v6 }
 0x108   : > { %vm582_vm4 = vcmp.ge.f32.partialorder %v542_v10, 0.0  ;;  %v1012_v16 = vpack.c.bf16 %v684_v11, %v684_v11  ;;  %v648_v22 = vsel %vm584_vm2, %v550_v5, %v616_v13  ;;  %v614_v18 = vmul.f32 0.01, %v542_v10 }
 0x109   : > { %v999_v17 = vpack.c.bf16 %v671_v12, %v671_v12  ;;  %829 = vst.msk [vmem:[%s1214_s6 + $0x30] sm:$0xf] %vm816_vm5, %v996_v14  ;;  %v687_v19 = vadd.f32 %v1201_v27, %v648_v22  ;;  %v630_v20 = vsel %vm566_vm3, %v478_v6, %v598_v15 }
 0x10a   : > { %845 = vst.msk [vmem:[%s1214_s6 + $0x70] sm:$0xf] %vm816_vm5, %v1012_v16  ;;  %v669_v21 = vadd.f32 %v1201_v27, %v630_v20  ;;  %v646_v23 = vsel %vm582_vm4, %v542_v10, %v614_v18 }
 0x10b   : > { %832 = vst.msk [vmem:[%s1214_s6 + $0x3c] sm:$0xf] %vm816_vm5, %v999_v17  ;;  %v1015_v24 = vpack.c.bf16 %v687_v19, %v687_v19  ;;  %v685_v25 = vadd.f32 %v1201_v27, %v646_v23 }
 0x10c   : > { %v997_v26 = vpack.c.bf16 %v669_v21, %v669_v21 }
 0x10d   : > { %848 = vst.msk [vmem:[%s1214_s6 + $0x7c] sm:$0xf] %vm816_vm5, %v1015_v24  ;;  %v1013_v28 = vpack.c.bf16 %v685_v25, %v685_v25 }
 0x10e   : > { %830 = vst.msk [vmem:[%s1214_s6 + $0x34] sm:$0xf] %vm816_vm5, %v997_v26 }
 0x10f   : > { %846 = vst.msk [vmem:[%s1214_s6 + $0x74] sm:$0xf] %vm816_vm5, %v1013_v28 }
 0x110 PF: > { %s14_s15 = sadd.s32 1, %s1107_s15  }
 0x111   : > { %p11_p4 = scmp.ge.s32.totalorder %s14_s15, 4  }
 0x113   :  { %13 = sbr.rel (!%p11_p4) target bundleno = 1 (0x1), region = 66 }

</bundles_post_ra>
